<compile_context>
chip_gen: v7x
topology: tpu7x:2x2x1
jax: 0.10.0
libtpu: 0.0.40
codegen_flags: <defaults>
</compile_context>

<pallas_src>
import functools

import jax
import jax.numpy as jnp
from jax import lax
from jax.experimental import pallas as pl
from jax.experimental.pallas import tpu as pltpu


_LANE = 128
_SUBLANE = 8
_FUSED_MAX_BYTES = 4 * 1024 * 1024     # f32 footprint of x for the fused path
_BLOCK_TARGET_ELEMS = 1024 * 1024      # ~4 MiB f32 per block in the tiled path
_MAX_LANE_TILE = 32 * _LANE            # 4096 lanes
_VMEM_LIMIT = 48 * 1024 * 1024         # safe on v5e/v6e (128 MiB) and v7x (64 MiB)


def _round_up(x: int, m: int) -> int:
    return ((x + m - 1) // m) * m


def _round_down(x: int, m: int) -> int:
    return (x // m) * m


def _apply_activation(y, activation: str, activation_param: float):
    if activation == "relu":
        return jnp.maximum(y, 0.0)
    if activation == "leaky_relu":
        return jnp.where(y >= 0.0, y, activation_param * y)
    if activation == "elu":
        return jnp.where(y >= 0.0, y, activation_param * (jnp.exp(y) - 1.0))
    if activation == "identity":
        return y
    raise RuntimeError(f"Unknown activation function {activation}")


# ---------------------------------------------------------------------------
# Fused single-pass kernel (whole x resident in VMEM)
# ---------------------------------------------------------------------------
def _fused_kernel(x_ref, w_ref, b_ref, o_ref, *, eps, activation,
                  activation_param):
    x = x_ref[...].astype(jnp.float32)                 # (N, C, HW)
    n, _, hw = x.shape
    inv_count = 1.0 / float(n * hw)

    # Two-pass (centered) batch statistics -- numerically stable, all in VMEM.
    s = jnp.sum(x, axis=2, keepdims=True)              # (N, C, 1)
    mean = jnp.sum(s, axis=0, keepdims=True) * inv_count   # (1, C, 1)
    d = x - mean
    v = jnp.sum(d * d, axis=2, keepdims=True)          # (N, C, 1)
    var = jnp.sum(v, axis=0, keepdims=True) * inv_count    # (1, C, 1)

    inv_std = lax.rsqrt(var + eps)
    scale = w_ref[...][None, :, :] * inv_std           # (1, C, 1)
    y = d * scale + b_ref[...][None, :, :]
    y = _apply_activation(y, activation, activation_param)
    o_ref[...] = y.astype(o_ref.dtype)


# ---------------------------------------------------------------------------
# Two-pass tiled kernels
# ---------------------------------------------------------------------------
def _stats_kernel(x_ref, stat_ref, *, hw, hw_tile):
    """Accumulate per-row [sum, sum_of_squares] over the lane-tile axis."""
    j = pl.program_id(1)

    @pl.when(j == 0)
    def _():
        stat_ref[...] = jnp.zeros_like(stat_ref)

    x = x_ref[...].astype(jnp.float32)
    if hw % hw_tile != 0:
        # Ragged lane tail: mask out padding columns so they do not pollute
        # the statistics (padding content of partial input blocks is garbage).
        col = lax.broadcasted_iota(jnp.int32, x.shape, 1) + j * hw_tile
        x = jnp.where(col < hw, x, 0.0)

    stat_ref[:, 0:1] += jnp.sum(x, axis=1, keepdims=True)
    stat_ref[:, 1:2] += jnp.sum(x * x, axis=1, keepdims=True)


def _norm_kernel(x_ref, ss_ref, o_ref, *, activation, activation_param):
    x = x_ref[...].astype(jnp.float32)
    ss = ss_ref[...]                                   # (row_tile, 2) f32
    y = x * ss[:, 0:1] + ss[:, 1:2]                    # one FMA per element
    y = _apply_activation(y, activation, activation_param)
    o_ref[...] = y.astype(o_ref.dtype)


# ---------------------------------------------------------------------------
# Tile selection (two-pass path)
# ---------------------------------------------------------------------------
def _select_tiles(rows: int, hw: int):
    # Lane tile: full extent when hw <= 128, else a multiple of 128 (<= 4096).
    if hw <= _LANE:
        hw_tile = hw
    else:
        hw_tile = min(_round_up(hw, _LANE), _MAX_LANE_TILE)

    # Sublane tile: full extent when rows <= 8, else a multiple of 8 capped so
    # a block is ~<= 1M f32 elements (~4 MiB).
    if rows <= _SUBLANE:
        row_tile = rows
    else:
        cap = max(_SUBLANE,
                  _round_down(max(_BLOCK_TARGET_ELEMS // hw_tile, _SUBLANE),
                              _SUBLANE))
        row_tile = min(_round_up(rows, _SUBLANE), cap)

    # Guarantee >= 2 blocks along a parallel axis when possible (v7x megacore).
    if pl.cdiv(rows, row_tile) < 2 and pl.cdiv(hw, hw_tile) < 2:
        if rows > _SUBLANE:
            row_tile = _round_up(pl.cdiv(rows, 2), _SUBLANE)
        elif hw > _LANE:
            hw_tile = _round_up(pl.cdiv(hw, 2), _LANE)

    return row_tile, hw_tile


# ---------------------------------------------------------------------------
# Wrapper
# ---------------------------------------------------------------------------
def abn_forward(
    x_nchw: jax.Array,
    weight: jax.Array,
    bias: jax.Array,
    *,
    eps: float = 1e-5,
    activation: str = "leaky_relu",
    activation_param: float = 0.01,
) -> jax.Array:
    """ABN forward (training-mode batch norm + activation). Input/output NCHW."""
    n, c, h, w = x_nchw.shape
    hw = h * w
    rows = n * c

    w_f32 = weight.astype(jnp.float32)
    b_f32 = bias.astype(jnp.float32)

    # TODO(synk): running_mean/running_var momentum updates (training-mode
    # buffer side effect) have no impact on this forward output; not produced.

    # ---------------- fused single-pass path ----------------
    if rows * hw * 4 <= _FUSED_MAX_BYTES:
        x3 = x_nchw.reshape(n, c, hw)                  # free view of NCHW
        kernel = functools.partial(
            _fused_kernel, eps=eps, activation=activation,
            activation_param=activation_param)
        out3 = pl.pallas_call(
            kernel,
            out_shape=jax.ShapeDtypeStruct((n, c, hw), x_nchw.dtype),
            grid=(1,),
            in_specs=[
                pl.BlockSpec((n, c, hw), lambda i: (0, 0, 0)),
                pl.BlockSpec((c, 1), lambda i: (0, 0)),
                pl.BlockSpec((c, 1), lambda i: (0, 0)),
            ],
            out_specs=pl.BlockSpec((n, c, hw), lambda i: (0, 0, 0)),
            compiler_params=pltpu.CompilerParams(
                dimension_semantics=("arbitrary",),
                vmem_limit_bytes=_VMEM_LIMIT,
            ),
        )(x3, w_f32.reshape(c, 1), b_f32.reshape(c, 1))
        return out3.reshape(n, c, h, w)

    # ---------------- two-pass tiled path ----------------
    x2d = x_nchw.reshape(rows, hw)                     # free view of NCHW
    row_tile, hw_tile = _select_tiles(rows, hw)
    grid = (pl.cdiv(rows, row_tile), pl.cdiv(hw, hw_tile))

    # Pass 1: per-row [sum, sumsq] packed into one (rows, 2) f32 output.
    stats = pl.pallas_call(
        functools.partial(_stats_kernel, hw=hw, hw_tile=hw_tile),
        out_shape=jax.ShapeDtypeStruct((rows, 2), jnp.float32),
        grid=grid,
        in_specs=[pl.BlockSpec((row_tile, hw_tile), lambda i, j: (i, j))],
        out_specs=pl.BlockSpec((row_tile, 2), lambda i, j: (i, 0)),
        compiler_params=pltpu.CompilerParams(
            dimension_semantics=("parallel", "arbitrary"),
            vmem_limit_bytes=_VMEM_LIMIT,
        ),
    )(x2d)

    # Tiny O(N*C) glue: fold over N, pre-compute per-row scale/shift.
    count = jnp.float32(n * hw)
    ch = stats.reshape(n, c, 2).sum(axis=0)            # (C, 2)
    mean = ch[:, 0] / count
    # Biased variance via E[x^2] - mean^2 with f32 accumulation; clamp at 0
    # guards cancellation.  (The fused path uses the centered formula.)
    var = jnp.maximum(ch[:, 1] / count - mean * mean, 0.0)
    inv_std = lax.rsqrt(var + jnp.float32(eps))
    scale = w_f32 * inv_std                            # (C,)
    shift = b_f32 - mean * scale                       # (C,)
    ss_rows = jnp.stack(
        [jnp.broadcast_to(scale[None, :], (n, c)).reshape(rows),
         jnp.broadcast_to(shift[None, :], (n, c)).reshape(rows)],
        axis=1).astype(jnp.float32)                    # (rows, 2)

    # Pass 2: normalize + activation; both axes parallel (megacore-friendly).
    out2d = pl.pallas_call(
        functools.partial(_norm_kernel, activation=activation,
                          activation_param=activation_param),
        out_shape=jax.ShapeDtypeStruct((rows, hw), x2d.dtype),
        grid=grid,
        in_specs=[
            pl.BlockSpec((row_tile, hw_tile), lambda i, j: (i, j)),
            pl.BlockSpec((row_tile, 2), lambda i, j: (i, 0)),
        ],
        out_specs=pl.BlockSpec((row_tile, hw_tile), lambda i, j: (i, j)),
        compiler_params=pltpu.CompilerParams(
            dimension_semantics=("parallel", "parallel"),
            vmem_limit_bytes=_VMEM_LIMIT,
        ),
    )(x2d, ss_rows)

    return out2d.reshape(n, c, h, w)


def abn_reference(x_nchw, weight, bias, *, eps=1e-5, activation_param=0.01):
    """Pure-JAX reference (training-mode BN + leaky_relu) for verification."""
    mean = jnp.mean(x_nchw, axis=(0, 2, 3), keepdims=True)
    var = jnp.mean((x_nchw - mean) ** 2, axis=(0, 2, 3), keepdims=True)
    y = (x_nchw - mean) * lax.rsqrt(var + eps)
    y = y * weight.reshape(1, -1, 1, 1) + bias.reshape(1, -1, 1, 1)
    return jnp.where(y >= 0.0, y, activation_param * y)


if __name__ == "__main__":
    key = jax.random.PRNGKey(0)
    N, C, H, W = 2, 4, 16, 16

    x = jax.random.normal(key, (N, C, H, W), dtype=jnp.float32)

    # Deterministic parameter init (matches ABN.reset_parameters).
    weight = jnp.ones((C,), dtype=jnp.float32)
    bias = jnp.zeros((C,), dtype=jnp.float32)

    out = abn_forward(x, weight, bias, eps=1e-5,
                      activation="leaky_relu", activation_param=0.01)
    out = jax.block_until_ready(out)

    ref = abn_reference(x, weight, bias)
    assert out.shape == (N, C, H, W)
    assert jnp.allclose(out, ref, atol=1e-4, rtol=1e-4), "mismatch vs reference"

    print("KERNEL_OK")
</pallas_src>

<mosaic_0001>
module attributes {stable_mosaic.version = 11 : i64} {
  func.func @_fused_kernel(%arg0: i32, %arg1: memref<2x4x256xf32, #tpu.memory_space<vmem>>, %arg2: memref<4x1xf32, #tpu.memory_space<vmem>>, %arg3: memref<4x1xf32, #tpu.memory_space<vmem>>, %arg4: memref<2x4x256xf32, #tpu.memory_space<vmem>>) attributes {dimension_semantics = [#tpu.dimension_semantics<arbitrary>], iteration_bounds = array<i64: 1>, scalar_prefetch = 0 : i64, scratch_operands = 0 : i64, tpu.core_type = #tpu.core_type<tc>, window_params = [{pipeline_mode = #tpu.pipeline_mode<synchronous>, transform_indices = @transform_0, window_bounds = array<i64: 2, 4, 256>}, {pipeline_mode = #tpu.pipeline_mode<synchronous>, transform_indices = @transform_1, window_bounds = array<i64: 4, 1>}, {pipeline_mode = #tpu.pipeline_mode<synchronous>, transform_indices = @transform_2, window_bounds = array<i64: 4, 1>}, {pipeline_mode = #tpu.pipeline_mode<synchronous>, transform_indices = @transform_3, window_bounds = array<i64: 2, 4, 256>}]} {
    %c0 = arith.constant 0 : index
    %c0_0 = arith.constant 0 : index
    %c0_1 = arith.constant 0 : index
    %0 = vector.load %arg1[%c0, %c0_0, %c0_1] : memref<2x4x256xf32, #tpu.memory_space<vmem>>, vector<2x4x256xf32>
    %cst = arith.constant dense<0.000000e+00> : vector<2x4xf32>
    %1 = vector.multi_reduction <add>, %0, %cst [2] : vector<2x4x256xf32> to vector<2x4xf32>
    %2 = vector.shape_cast %1 : vector<2x4xf32> to vector<2x4x1xf32>
    %cst_2 = arith.constant dense<0.000000e+00> : vector<4x1xf32>
    %3 = vector.multi_reduction <add>, %2, %cst_2 [0] : vector<2x4x1xf32> to vector<4x1xf32>
    %4 = vector.shape_cast %3 : vector<4x1xf32> to vector<1x4x1xf32>
    %cst_3 = arith.constant 0.001953125 : f32
    %5 = vector.broadcast %cst_3 : f32 to vector<1x4x1xf32>
    %6 = arith.mulf %4, %5 : vector<1x4x1xf32>
    %7 = vector.broadcast %6 : vector<1x4x1xf32> to vector<2x4x256xf32>
    %8 = arith.subf %0, %7 : vector<2x4x256xf32>
    %9 = arith.mulf %8, %8 : vector<2x4x256xf32>
    %cst_4 = arith.constant dense<0.000000e+00> : vector<2x4xf32>
    %10 = vector.multi_reduction <add>, %9, %cst_4 [2] : vector<2x4x256xf32> to vector<2x4xf32>
    %11 = vector.shape_cast %10 : vector<2x4xf32> to vector<2x4x1xf32>
    %cst_5 = arith.constant dense<0.000000e+00> : vector<4x1xf32>
    %12 = vector.multi_reduction <add>, %11, %cst_5 [0] : vector<2x4x1xf32> to vector<4x1xf32>
    %13 = vector.shape_cast %12 : vector<4x1xf32> to vector<1x4x1xf32>
    %cst_6 = arith.constant 0.001953125 : f32
    %14 = vector.broadcast %cst_6 : f32 to vector<1x4x1xf32>
    %15 = arith.mulf %13, %14 : vector<1x4x1xf32>
    %cst_7 = arith.constant 9.99999974E-6 : f32
    %16 = vector.broadcast %cst_7 : f32 to vector<1x4x1xf32>
    %17 = arith.addf %15, %16 : vector<1x4x1xf32>
    %18 = math.rsqrt %17 : vector<1x4x1xf32>
    %c0_8 = arith.constant 0 : index
    %c0_9 = arith.constant 0 : index
    %19 = vector.load %arg2[%c0_8, %c0_9] : memref<4x1xf32, #tpu.memory_space<vmem>>, vector<4x1xf32>
    %20 = vector.shape_cast %19 : vector<4x1xf32> to vector<1x4x1xf32>
    %21 = arith.mulf %20, %18 : vector<1x4x1xf32>
    %22 = vector.broadcast %21 : vector<1x4x1xf32> to vector<2x4x256xf32>
    %23 = arith.mulf %8, %22 : vector<2x4x256xf32>
    %c0_10 = arith.constant 0 : index
    %c0_11 = arith.constant 0 : index
    %24 = vector.load %arg3[%c0_10, %c0_11] : memref<4x1xf32, #tpu.memory_space<vmem>>, vector<4x1xf32>
    %25 = vector.shape_cast %24 : vector<4x1xf32> to vector<1x4x1xf32>
    %26 = vector.broadcast %25 : vector<1x4x1xf32> to vector<2x4x256xf32>
    %27 = arith.addf %23, %26 : vector<2x4x256xf32>
    %cst_12 = arith.constant 0.000000e+00 : f32
    %28 = vector.broadcast %cst_12 : f32 to vector<2x4x256xf32>
    %29 = arith.cmpf oge, %27, %28 : vector<2x4x256xf32>
    %cst_13 = arith.constant 0.00999999977 : f32
    %30 = vector.broadcast %cst_13 : f32 to vector<2x4x256xf32>
    %31 = arith.mulf %30, %27 : vector<2x4x256xf32>
    %32 = arith.select %29, %27, %31 : vector<2x4x256xi1>, vector<2x4x256xf32>
    %c0_14 = arith.constant 0 : index
    %c0_15 = arith.constant 0 : index
    %c0_16 = arith.constant 0 : index
    %33 = vector.load %arg4[%c0_14, %c0_15, %c0_16] : memref<2x4x256xf32, #tpu.memory_space<vmem>>, vector<2x4x256xf32>
    tpu.vector_store %arg4[%c0_14, %c0_15, %c0_16], %32 {strides = array<i32>} : memref<2x4x256xf32, #tpu.memory_space<vmem>>, vector<2x4x256xf32>,
    return
  }
  func.func @transform_0(%arg0: i32) -> (i32, i32, i32) {
    %c0_i32 = arith.constant 0 : i32
    %c0_i32_0 = arith.constant 0 : i32
    %c0_i32_1 = arith.constant 0 : i32
    %c0_i32_2 = arith.constant 0 : i32
    return %c0_i32, %c0_i32_0, %c0_i32_1 : i32, i32, i32
  }
  func.func @transform_1(%arg0: i32) -> (i32, i32) {
    %c0_i32 = arith.constant 0 : i32
    %c0_i32_0 = arith.constant 0 : i32
    %c0_i32_1 = arith.constant 0 : i32
    return %c0_i32, %c0_i32_0 : i32, i32
  }
  func.func @transform_2(%arg0: i32) -> (i32, i32) {
    %c0_i32 = arith.constant 0 : i32
    %c0_i32_0 = arith.constant 0 : i32
    %c0_i32_1 = arith.constant 0 : i32
    return %c0_i32, %c0_i32_0 : i32, i32
  }
  func.func @transform_3(%arg0: i32) -> (i32, i32, i32) {
    %c0_i32 = arith.constant 0 : i32
    %c0_i32_0 = arith.constant 0 : i32
    %c0_i32_1 = arith.constant 0 : i32
    %c0_i32_2 = arith.constant 0 : i32
    return %c0_i32, %c0_i32_0, %c0_i32_1 : i32, i32, i32
  }
}

</mosaic_0001>

<bundles_post_ra>
// kernel: tpu_custom_call.1
= control target key start
LH: loop header
LB: loop body
LE: loop exit
PB: predicated region body
PF: predicated region fallthrough
CT: control target
= control target key end

     0   :  { %8 = vsyncpa [#allocation3], 0  ;;  %s277_s0 = inlined_call_operand.hbm [shape: f32[2,4,256], index: 0, kind: input, shape index: {}]   ;;  %s278_s1 = inlined_call_operand.vmem [shape: f32[4,1], index: 1, kind: input, shape index: {}]   ;;  %s279_s2 = inlined_call_operand.vmem [shape: f32[4,1], index: 2, kind: input, shape index: {}]   ;;  %s280_s3 = inlined_call_operand.hbm [shape: f32[2,4,256], index: 3, kind: output, shape index: {}]  }
   0x1   :  { %9 = vsyncpa [#allocation4], 0  ;;  %s203_s12 = smov [#allocation2]   ;;  %s155_s16 = scalar_lea.hbm %s277_s0, 256 }
   0x2   :  { %s15_s13 = sshll.u32 %s203_s12, 4  ;;  %p156_p0 = scmp.ne.s32.totalorder %s277_s0, %s155_s16  ;;  %s16_s13 = int_to_ptr.vmem [resolvable:$true] %s15_s13 }
   0x3   :  { %p159_p1 = scmp.lt.u32.totalorder %s155_s16, %s277_s0 }
   0x5   :  { %p161_p2 = pnand %p159_p1, %p156_p0 }
   0x7   :  { %164 = shalt.err (!%p161_p2)
}
   0x8   :  { %s165_s21 = scalar_lea.vmem %s16_s13, 256  ;;  %p170_p4 = scmp.lt.s32.totalorder %s16_s13, %s16_s13 }
   0x9   :  { %p166_p3 = scmp.ne.s32.totalorder %s16_s13, %s165_s21  ;;  %p171_p5 = scmp.lt.s32.totalorder %s165_s21, %s165_s21 }
   0xb   :  { %p172_p6 = por %p171_p5, %p170_p4 }
   0xd   :  { %p173_p7 = pnand %p172_p6, %p166_p3 }
   0xf   :  { %176 = shalt.err (!%p173_p7)
}
  0x10   :  { %s204_s22 = smov 128   ;;  %s205_s23 = smov 8  }
  0x11   :  { %21 = dma.hbm_to_vmem [thread:$0]  %s277_s0, 256, %s16_s13, [#allocation3], %s204_s22, %s204_s22, %s205_s23  }
  0x12   :  { %199 = dma.done.wait [#allocation3], 256  }
  0x13   :  { %200 = vsyncadd [#allocation3], 4294967040  ;;  %vm37_vm0 = vcmask 1043456   ;;  %v29_v0 = vld [vmem:[#allocation2] sm:$0xff]  ;;  %v30_v1 = vld [vmem:[#allocation2 + $0x8] sm:$0xff]  ;;  %v56_v12 = vlaneseq  ;;  %v207_v35 = vmov 0  }
  0x14   :  { %v33_v2 = vcombine.high %v29_v0, %v29_v0  ;;  %v38_v3 = vsel %vm37_vm0, %v29_v0, 0.0  ;;  %v34_v4 = vcombine.high %v30_v1, %v30_v1  ;;  %v43_v6 = vsel %vm37_vm0, %v30_v1, 0.0  ;;  %149 = vset.pattern.permute.xlu0 %v207_v35  ;;  %150 = vset.pattern.permute.xlu1 %v207_v35  ;;  %v103_v36 = vld [vmem:[%s279_s2] sm:$0xf]  ;;  %s208_s2 = smov [#allocation5]  }
  0x15   :  { %v206_v10 = vmov 839922192   ;;  %v57_v15 = vshrl.u32 %v56_v12, 7  ;;  %v87_v44 = vld [vmem:[%s278_s1] sm:$0xf]  ;;  %s131_s29 = sshll.u32 %s208_s2, 4  ;;  %s132_s29 = int_to_ptr.vmem [resolvable:$true] %s131_s29 }
  0x16   :  { %v39_v5 = vsel %vm37_vm0, %v33_v2, 0.0  ;;  %v44_v7 = vsel %vm37_vm0, %v34_v4, 0.0  ;;  %v54_v11 = vunpack.c.l.s4 %v206_v10  ;;  %s177_s1 = scalar_lea.vmem %s132_s29, 256  ;;  %p182_p9 = scmp.lt.s32.totalorder %s132_s29, %s132_s29 }
  0x17   :  { %v40_v8 = vadd.f32 %v39_v5, %v38_v3  ;;  %v45_v9 = vadd.f32 %v44_v7, %v43_v6  ;;  %p178_p8 = scmp.ne.s32.totalorder %s132_s29, %s177_s1  ;;  %p183_p10 = scmp.lt.s32.totalorder %s177_s1, %s177_s1 }
  0x18   :  { %v55_v14 = vunpack.c.0.s8 %v54_v11 }
  0x19   :  { %41 = vadd.xlane.f32.xlu0 %v40_v8  ;;  %p184_p11 = por %p183_p10, %p182_p9 }
  0x1a   :  { %v58_v19 = vsub.s32 %v55_v14, %v57_v15 }
  0x1b   :  { %p185_p12 = pnand %p184_p11, %p178_p8 }
  0x1d   :  { %46 = vadd.xlane.f32.xlu0 %v45_v9 }
  0xa6   :  { %v42_v13 = vpop.xlane.xlu0 %41 }
  0xa7   :  { %v48_v17 = vsel %vm37_vm0, %v42_v13, 0.0 }
  0xaa   :  { %v47_v16 = vpop.xlane.xlu0 %46 }
  0xab   :  { %v49_v18 = vsel %vm37_vm0, %v47_v16, 0.0 }
  0xac   :  { %v50_v20 = vadd.f32 %v49_v18, %v48_v17 }
  0xae   :  { %v51_v21 = vmul.f32 0.001953125, %v50_v20 }
  0xb0   :  { %v59_v22 = vrot.slane %v51_v21, %v58_v19 }
  0xb2   :  { %v62_v23 = vsub.f32 %v30_v1, %v59_v22  ;;  %v61_v24 = vsub.f32 %v29_v0, %v59_v22 }
  0xb4   :  { %v63_v25 = vmul.f32 %v61_v24, %v61_v24  ;;  %v64_v26 = vmul.f32 %v62_v23, %v62_v23 }
  0xb6   :  { %v67_v27 = vcombine.high %v63_v25, %v63_v25  ;;  %v68_v28 = vcombine.high %v64_v26, %v64_v26  ;;  %v71_v29 = vsel %vm37_vm0, %v63_v25, 0.0  ;;  %v76_v33 = vsel %vm37_vm0, %v64_v26, 0.0 }
  0xb8   :  { %v72_v30 = vsel %vm37_vm0, %v67_v27, 0.0  ;;  %v77_v32 = vsel %vm37_vm0, %v68_v28, 0.0 }
  0xb9   :  { %v73_v31 = vadd.f32 %v72_v30, %v71_v29  ;;  %v78_v34 = vadd.f32 %v77_v32, %v76_v33 }
  0xbb   :  { %74 = vadd.xlane.f32.xlu1 %v73_v31 }
  0xbf   :  { %79 = vadd.xlane.f32.xlu1 %v78_v34 }
  0xd0   :  { %106 = vperm.xlu1 %150, %v103_v36  }
 0x148   :  { %v75_v37 = vpop.xlane.xlu1 %74 }
 0x149   :  { %v81_v39 = vsel %vm37_vm0, %v75_v37, 0.0 }
 0x14c   :  { %v80_v38 = vpop.xlane.xlu1 %79 }
 0x14d   :  { %v82_v40 = vsel %vm37_vm0, %v80_v38, 0.0 }
 0x14e   :  { %v83_v41 = vadd.f32 %v82_v40, %v81_v39 }
 0x150   :  { %v84_v42 = vmul.f32 0.001953125, %v83_v41  ;;  %v107_v47 = vpop.permute.xlu1 %106 }
 0x151   :  { %v114_v50 = vrot.slane %v107_v47, %v58_v19 }
 0x152   :  { %v85_v43 = vadd.f32 1e-05, %v84_v42 }
 0x154   :  { %153 = vrsqrt.f32 %v85_v43 }
 0x15e   :  { %v154_v45 = vpop.eup %153 }
 0x15f   :  { %v88_v46 = vmul.f32 %v154_v45, %v87_v44 }
 0x161   :  { %91 = vperm.xlu0 %149, %v88_v46  }
 0x1e0   :  { %v92_v48 = vpop.permute.xlu0 %91 }
 0x1e1   :  { %v99_v49 = vrot.slane %v92_v48, %v58_v19 }
 0x1e3   :  { %v101_v51 = vmul.f32 %v99_v49, %v61_v24  ;;  %v102_v52 = vmul.f32 %v99_v49, %v62_v23 }
 0x1e5   :  { %v116_v53 = vadd.f32 %v114_v50, %v101_v51  ;;  %v117_v54 = vadd.f32 %v114_v50, %v102_v52 }
 0x1e7   :  { %v120_v55 = vmul.f32 0.01, %v116_v53  ;;  %v121_v56 = vmul.f32 0.01, %v117_v54  ;;  %vm118_vm1 = vcmp.ge.f32.partialorder %v116_v53, 0.0  ;;  %vm119_vm2 = vcmp.ge.f32.partialorder %v117_v54, 0.0 }
 0x1e9   :  { %v122_v57 = vsel %vm118_vm1, %v116_v53, %v120_v55  ;;  %v123_v58 = vsel %vm119_vm2, %v117_v54, %v121_v56 }
 0x1ea   :  { %124 = vst [vmem:[#allocation5] sm:$0xff] %v122_v57  ;;  %125 = vst [vmem:[#allocation5 + $0x8] sm:$0xff] %v123_v58 }
 0x1eb   :  { %188 = shalt.err (!%p185_p12)
}
 0x1ec   :  { %s189_s5 = scalar_lea.hbm %s280_s3, 256 }
 0x1ed   :  { %p190_p13 = scmp.ne.s32.totalorder %s280_s3, %s189_s5  ;;  %p193_p0 = scmp.lt.u32.totalorder %s189_s5, %s280_s3 }
 0x1ef   :  { %p195_p1 = pnand %p193_p0, %p190_p13 }
 0x1f1   :  { %198 = shalt.err (!%p195_p1)
}
 0x1f2   :  { %137 = dma.vmem_to_hbm [thread:$0]  %s132_s29, 256, %s280_s3, [#allocation4], %s204_s22, %s204_s22, %s205_s23  }
 0x1f3   :  { %201 = dma.done.wait [#allocation4], 256  }
 0x1f4   :  { %202 = vsyncadd [#allocation4], 4294967040 }
 0x1f5   :  { %141 = vsyncpa [#allocation3], 1 }
 0x1f6   :  { %142 = vsyncpa [#allocation4], 1 }

</bundles_post_ra>
